<compile_context>
chip_gen: v6e
topology: v6e:2x2x1
jax: 0.10.0
libtpu: 0.0.40
codegen_flags: <defaults>
</compile_context>

<pallas_src>
from functools import partial

import jax
import jax.numpy as jnp
from jax.experimental import pallas as pl
from jax.experimental.pallas import tpu as pltpu


def _linear_kernel(params_ref, xt_ref, o_ref):
    # params_ref: (IN+1,) f32 in SMEM  -> [w0, ..., w_{IN-1}, b]
    # xt_ref:     (IN, S, 128) in VMEM -> x^T tile, batch on (sublane, lane)
    # o_ref:      (OUT, S, 128) in VMEM -> dense output tile
    in_features = xt_ref.shape[0]
    # Start from the bias broadcast over the whole tile, then accumulate
    # scalar * slab FMAs on the VPU (loop unrolled at trace time, IN=3).
    acc = jnp.full(o_ref.shape, params_ref[in_features], jnp.float32)
    for k in range(in_features):
        x_k = xt_ref[k][None].astype(jnp.float32)          # (1, S, 128)
        acc = acc + x_k * params_ref[k]
    o_ref[...] = acc.astype(o_ref.dtype)


@partial(jax.jit, static_argnames=("block_rows",))
def linear_forward(x, weight, bias, *, block_rows=1024):
    """x: (B, in_features), weight: (out, in), bias: (out,) -> (B, out)."""
    B, IN = x.shape
    OUT, IN_w = weight.shape
    assert IN_w == IN, "weight/in_features mismatch"
    assert OUT == 1, "module spec is nn.Linear(3, 1)"

    lane = 128
    sub = 8

    # Pad batch only to a multiple of 128 lanes (no padding to tile size).
    b_pad = pl.cdiv(B, lane) * lane
    rows = b_pad // lane                                     # sublane rows

    # Sublane tile: multiple of 8 (or the full row count if it is smaller).
    if rows <= block_rows:
        s_rows = rows                                        # full-dim block
    else:
        s_rows = (block_rows // sub) * sub
    grid = (pl.cdiv(rows, s_rows),)

    # Lane/sublane-dense batch-major layout: (IN, rows, 128). Under jit the
    # pad + transpose + reshape fuse into a single layout pass.
    x_pad = jnp.pad(x, ((0, b_pad - B), (0, 0)))
    xt = x_pad.T.reshape(IN, rows, lane)

    # Weights + bias as one tiny f32 vector resident in SMEM (no VMEM tiles).
    params = jnp.concatenate(
        [weight.reshape(-1).astype(jnp.float32),
         bias.reshape(-1).astype(jnp.float32)])              # (IN + OUT,)

    out3 = pl.pallas_call(
        _linear_kernel,
        out_shape=jax.ShapeDtypeStruct((OUT, rows, lane), x.dtype),
        grid_spec=pl.GridSpec(
            grid=grid,
            in_specs=[
                # Tiny parameter vector, whole-array in SMEM.
                pl.BlockSpec(memory_space=pltpu.MemorySpace.SMEM),
                # x^T tile: all IN rows, S sublane rows x 128 lanes of batch.
                pl.BlockSpec((IN, s_rows, lane), lambda i: (0, i, 0)),
            ],
            # Dense (8,128)-aligned output tile -> unmasked vector stores.
            out_specs=pl.BlockSpec((OUT, s_rows, lane), lambda i: (0, i, 0)),
        ),
        compiler_params=pltpu.CompilerParams(
            dimension_semantics=("parallel",)),
    )(params, xt)

    # Strip padded lanes, return in PyTorch's (B, out_features) layout
    # (fuses with the consumer under jit).
    return out3.reshape(OUT, b_pad)[:, :B].T


if __name__ == "__main__":
    key = jax.random.PRNGKey(0)
    k_x, k_w, k_b = jax.random.split(key, 3)

    B, IN, OUT = 8, 3, 1

    # Deterministic parameter init (matches nn.Linear(3, 1) shapes).
    bound = 1.0 / (IN ** 0.5)
    weight = jax.random.uniform(k_w, (OUT, IN), jnp.float32, -bound, bound)
    bias = jax.random.uniform(k_b, (OUT,), jnp.float32, -bound, bound)

    x = jax.random.normal(k_x, (B, IN), jnp.float32)

    out = linear_forward(x, weight, bias)
    out = jax.block_until_ready(out)

    # Sanity check against plain-JAX reference.
    ref = x @ weight.T + bias
    assert out.shape == (B, OUT)
    assert jnp.allclose(out, ref, atol=1e-5, rtol=1e-5)

    # Extra check: multi-block grid + partial last block + padded tail lanes.
    x2 = jax.random.normal(k_x, (1999, IN), jnp.float32)
    out2 = jax.block_until_ready(linear_forward(x2, weight, bias, block_rows=8))
    ref2 = x2 @ weight.T + bias
    assert out2.shape == (1999, OUT)
    assert jnp.allclose(out2, ref2, atol=1e-5, rtol=1e-5)

    print("KERNEL_OK")
</pallas_src>

<mosaic_0001>
module attributes {stable_mosaic.version = 11 : i64} {
  func.func @_linear_kernel(%arg0: i32, %arg1: memref<4xf32, #tpu.memory_space<smem>>, %arg2: memref<3x1x128xf32, #tpu.memory_space<vmem>>, %arg3: memref<1x1x128xf32, #tpu.memory_space<vmem>>) attributes {dimension_semantics = [#tpu.dimension_semantics<parallel>], iteration_bounds = array<i64: 1>, scalar_prefetch = 0 : i64, scratch_operands = 0 : i64, tpu.core_type = #tpu.core_type<tc>, window_params = [{transform_indices = @transform_0, window_bounds = array<i64: 4>}, {transform_indices = @transform_1, window_bounds = array<i64: 3, 1, 128>}, {transform_indices = @transform_2, window_bounds = array<i64: 1, 1, 128>}]} {
    %c3 = arith.constant 3 : index
    %0 = memref.load %arg1[%c3] : memref<4xf32, #tpu.memory_space<smem>>
    %1 = vector.broadcast %0 : f32 to vector<1x1x128xf32>
    %c0 = arith.constant 0 : index
    %c0_0 = arith.constant 0 : index
    %c0_1 = arith.constant 0 : index
    %2 = vector.load %arg2[%c0, %c0_0, %c0_1] : memref<3x1x128xf32, #tpu.memory_space<vmem>>, vector<1x1x128xf32>
    %3 = vector.shape_cast %2 : vector<1x1x128xf32> to vector<1x128xf32>
    %4 = vector.shape_cast %3 : vector<1x128xf32> to vector<1x1x128xf32>
    %c0_2 = arith.constant 0 : index
    %5 = memref.load %arg1[%c0_2] : memref<4xf32, #tpu.memory_space<smem>>
    %6 = vector.broadcast %5 : f32 to vector<1x1x128xf32>
    %7 = arith.mulf %4, %6 : vector<1x1x128xf32>
    %8 = arith.addf %1, %7 : vector<1x1x128xf32>
    %c1 = arith.constant 1 : index
    %c0_3 = arith.constant 0 : index
    %c0_4 = arith.constant 0 : index
    %9 = vector.load %arg2[%c1, %c0_3, %c0_4] : memref<3x1x128xf32, #tpu.memory_space<vmem>>, vector<1x1x128xf32>
    %10 = vector.shape_cast %9 : vector<1x1x128xf32> to vector<1x128xf32>
    %11 = vector.shape_cast %10 : vector<1x128xf32> to vector<1x1x128xf32>
    %c1_5 = arith.constant 1 : index
    %12 = memref.load %arg1[%c1_5] : memref<4xf32, #tpu.memory_space<smem>>
    %13 = vector.broadcast %12 : f32 to vector<1x1x128xf32>
    %14 = arith.mulf %11, %13 : vector<1x1x128xf32>
    %15 = arith.addf %8, %14 : vector<1x1x128xf32>
    %c2 = arith.constant 2 : index
    %c0_6 = arith.constant 0 : index
    %c0_7 = arith.constant 0 : index
    %16 = vector.load %arg2[%c2, %c0_6, %c0_7] : memref<3x1x128xf32, #tpu.memory_space<vmem>>, vector<1x1x128xf32>
    %17 = vector.shape_cast %16 : vector<1x1x128xf32> to vector<1x128xf32>
    %18 = vector.shape_cast %17 : vector<1x128xf32> to vector<1x1x128xf32>
    %c2_8 = arith.constant 2 : index
    %19 = memref.load %arg1[%c2_8] : memref<4xf32, #tpu.memory_space<smem>>
    %20 = vector.broadcast %19 : f32 to vector<1x1x128xf32>
    %21 = arith.mulf %18, %20 : vector<1x1x128xf32>
    %22 = arith.addf %15, %21 : vector<1x1x128xf32>
    %c0_9 = arith.constant 0 : index
    %c0_10 = arith.constant 0 : index
    %c0_11 = arith.constant 0 : index
    %23 = vector.load %arg3[%c0_9, %c0_10, %c0_11] : memref<1x1x128xf32, #tpu.memory_space<vmem>>, vector<1x1x128xf32>
    tpu.vector_store %arg3[%c0_9, %c0_10, %c0_11], %22 {strides = array<i32>} : memref<1x1x128xf32, #tpu.memory_space<vmem>>, vector<1x1x128xf32>,
    return
  }
  func.func @transform_0(%arg0: i32) -> i32 {
    %c0_i32 = arith.constant 0 : i32
    %c0_i32_0 = arith.constant 0 : i32
    return %c0_i32 : i32
  }
  func.func @transform_1(%arg0: i32) -> (i32, i32, i32) {
    %c0_i32 = arith.constant 0 : i32
    %c0_i32_0 = arith.constant 0 : i32
    %c0_i32_1 = arith.constant 0 : i32
    return %c0_i32, %arg0, %c0_i32_0 : i32, i32, i32
  }
  func.func @transform_2(%arg0: i32) -> (i32, i32, i32) {
    %c0_i32 = arith.constant 0 : i32
    %c0_i32_0 = arith.constant 0 : i32
    %c0_i32_1 = arith.constant 0 : i32
    return %c0_i32, %arg0, %c0_i32_0 : i32, i32, i32
  }
}

</mosaic_0001>

<bundles_post_ra>
// kernel: linear_forward.1
= control target key start
LH: loop header
LB: loop body
LE: loop exit
PB: predicated region body
PF: predicated region fallthrough
CT: control target
= control target key end

     0   :  { %7 = vsyncpa [#allocation3], 0  ;;  %s100_s0 = inlined_call_operand.vmem [shape: f32[4], index: 0, kind: input, shape index: {}]   ;;  %s101_s1 = inlined_call_operand.vmem [shape: f32[3,1,128], index: 1, kind: input, shape index: {}]   ;;  %s102_s2 = inlined_call_operand.vmem [shape: f32[1,1,128], index: 2, kind: output, shape index: {}]  }
   0x1   :  { %s14_s11 = sshll.u32 %s100_s0, 4  ;;  %s15_s11 = int_to_ptr.vmem [resolvable:$true] %s14_s11 }
   0x2   :  { %s55_s12 = scalar_lea.vmem %s15_s11, 16  ;;  %p60_p1 = scmp.lt.s32.totalorder %s15_s11, %s15_s11 }
   0x3   :  { %p56_p0 = scmp.ne.s32.totalorder %s15_s11, %s55_s12  ;;  %p61_p2 = scmp.lt.s32.totalorder %s55_s12, %s55_s12 }
   0x5   :  { %p62_p3 = por %p61_p2, %p60_p1 }
   0x7   :  { %p63_p4 = pnand %p62_p3, %p56_p0 }
   0x9   :  { %66 = shalt.err (!%p63_p4)
}
   0xa   :  { %s69_s13 = smov [#allocation2]  }
   0xb   :  { %17 = dma.vmem_to_smem %s15_s11, 16, %s69_s13, [#allocation3]  }
   0xc   :  { %67 = dma.done.wait [#allocation3], 16  }
   0xd   :  { %68 = vsyncadd [#allocation3], 4294967280 }
   0xe   :  { %23 = sfence }
   0xf   :  { %s49_s14 = sld [smem:[#allocation2 + $0x3]]  ;;  %v26_v0 = vld [vmem:[%s101_s1] sm:$0x1]  ;;  %v50_v1 = vld [vmem:[%s101_s1 + $0x1] sm:$0x1] }
  0x10   :  { %s27_s15 = sld [smem:[#allocation2]]  ;;  %v52_v4 = vld [vmem:[%s101_s1 + $0x2] sm:$0x1] }
  0x11   :  { %s51_s16 = sld [smem:[#allocation2 + $0x1]] }
  0x12   :  { %s53_s17 = sld [smem:[#allocation2 + $0x2]] }
  0x15   :  { %v25_v2 = vstv %s49_s14 }
  0x16   :  { %v28_v3 = vstv %s27_s15 }
  0x17   :  { %v29_v5 = vmul.f32 %v28_v3, %v26_v0  ;;  %v34_v6 = vstv %s51_s16 }
  0x18   :  { %v35_v7 = vmul.f32 %v50_v1, %v34_v6  ;;  %v40_v8 = vstv %s53_s17 }
  0x19   :  { %v30_v9 = vadd.f32 %v29_v5, %v25_v2  ;;  %v41_v10 = vmul.f32 %v52_v4, %v40_v8 }
  0x1b   :  { %v36_v11 = vadd.f32 %v35_v7, %v30_v9 }
  0x1d   :  { %v42_v12 = vadd.f32 %v41_v10, %v36_v11 }
  0x1f   :  { %43 = vst [vmem:[%s102_s2] sm:$0x1] %v42_v12 }
  0x20   :  { %48 = vsyncpa [#allocation3], 1 }

</bundles_post_ra>
